<compile_context>
chip_gen: v6e
topology: v6e:2x2x1
jax: 0.10.0
libtpu: 0.0.40
codegen_flags: <defaults>
</compile_context>

<pallas_src>
import numpy as np
import jax
import jax.numpy as jnp
from jax import lax
from jax.experimental import pallas as pl
from jax.experimental.pallas import tpu as pltpu


def _make_kernel(BB, C, I, N, dtot, d_list):
    """Fused SymmetricContraction kernel for one batch block of BB atoms.

    Working layout: rows r = c*BB + b (channel-major), lanes = flattened coupling
    axis of ALL output irreps concatenated (block-diagonal Ut/St fuse the irreps
    into a single MXU chain per correlation level).
    """

    def kernel(y_ref, x_ref, rep_ref, wt_ref, *rest):
        # y_ref  : (BB, E)        node_attrs block (element weights, general)
        # x_ref  : (C, BB, I)     features, channel-major
        # rep_ref: (I, Pmax) 0/1  lane p selects x[..., p % I]
        # wt_ref : (C, E, Ktot)   fused internal weights W[e,k,c] stored as [c,e,k]
        # rest   : ut_1..ut_N (Ktot, dtot*I**nu)  zero-padded block-diagonal U^T,
        #          st_1..st_N (dtot*I**nu, dtot*I**(nu-1)) block-diagonal group-sum,
        #          out_ref (BB, C*dtot), wsel_scr (BB*C, Ktot), xrep_scr (BB*C, Pmax)
        ut = rest[:N]
        st = rest[N:2 * N]
        out_ref = rest[2 * N]
        wsel_scr = rest[2 * N + 1]
        xrep_scr = rest[2 * N + 2]

        y_blk = y_ref[...]                                     # (BB, E)
        rep = rep_ref[...]                                     # (I, Pmax)

        # Stage per-channel data with a fori_loop (code size independent of C):
        #   wsel[c*BB+b, k] = sum_e y[b,e] * W[e,k,c]   (exact element contraction)
        #   xrep[c*BB+b, p] = x[b,c, p % I]              (lane-dense replication)
        # Both are tiny matmuls on the otherwise idle MXU; stores are BB-row,
        # full-lane dynamic slices at BB-aligned offsets.
        def stage(c, carry):
            r0 = pl.multiple_of(c * BB, BB)
            wsel_scr[pl.ds(r0, BB), :] = jnp.dot(
                y_blk, wt_ref[c], preferred_element_type=jnp.float32)
            xrep_scr[pl.ds(r0, BB), :] = jnp.dot(
                x_ref[c], rep, preferred_element_type=jnp.float32)
            return carry

        lax.fori_loop(0, C, stage, 0)

        wsel = wsel_scr[...]                                   # (BB*C, Ktot)
        xt = xrep_scr[...]                                     # (BB*C, Pmax)

        # Correlation-N main term (all irreps at once via block-diagonal constants):
        t = jnp.dot(wsel, ut[N - 1][...], preferred_element_type=jnp.float32)
        t = t * xt
        out = jnp.dot(t, st[N - 1][...], preferred_element_type=jnp.float32)

        # Lower correlation orders.  Accumulate form (out = out + dot) lets the
        # MXU result buffer accumulate in place on v7x; then multiply by x along
        # the current coupling lane and group-sum over it with a 0/1 matmul.
        for nu in range(N - 1, 0, -1):
            pnu = dtot * I ** nu
            out = out + jnp.dot(wsel, ut[nu - 1][...],
                                preferred_element_type=jnp.float32)
            out = out * xt[:, :pnu]
            out = jnp.dot(out, st[nu - 1][...],
                          preferred_element_type=jnp.float32)  # (BB*C, dtot*I**(nu-1))

        # out: (BB*C, dtot) channel-major rows.  Fold channels into lanes with
        # static row slices (no permutation matrix) and issue ONE lane-dense
        # store per block in the torch layout [irrep, c, j].
        pieces = []
        src = 0
        for d in d_list:
            for c in range(C):
                pieces.append(out[c * BB:(c + 1) * BB, src:src + d])
            src += d
        out_ref[...] = jnp.concatenate(pieces, axis=1)

    return kernel


def _pick_batch_block(B, C, I, Ktot, dtot, N, vmem_budget_bytes=6 << 20):
    """Pick BB from a VMEM budget; prefer >=2 grid steps (megacore / DMA overlap)."""
    Pmax = dtot * I ** N
    per_row = 4 * C * (3 * Pmax + Ktot + I + 2 * dtot)        # approx f32 live bytes / atom
    cap = max(1, vmem_budget_bytes // max(per_row, 1))
    divisors = [d for d in range(1, B + 1) if B % d == 0]
    aligned = [d for d in divisors if d % 8 == 0 or d == B]   # (8,128) sublane constraint
    ok = [d for d in aligned if d <= cap] or aligned
    multi = [d for d in ok if B // d >= 2]
    return max(multi) if multi else max(ok)


def symmetric_contraction(x, y, params, *, batch_block=None):
    """SymmetricContraction.forward.

    x: (B, C, I) per-channel features on the coupling irreps (flattened to I).
    y: (B, E) node_attrs (element weights; need not be strictly one-hot).
    params: list of (d_out, [U_nu], [W_nu]) per output irrep with
            U_nu: (d_out, I,..nu..,I, K_nu) and W_nu: (E, K_nu, C).
    Returns (B, C * sum(d_out)) float32 in the torch module's output layout.
    """
    x = jnp.asarray(x, jnp.float32)
    y = jnp.asarray(y, jnp.float32)
    B, C, I = x.shape
    E = y.shape[1]
    N = len(params[0][1])
    d_list = [int(p[0]) for p in params]
    dtot = sum(d_list)
    Pmax = dtot * I ** N

    # ---- global k layout: level-major, irrep-minor ---------------------------------
    koff, Ktot = {}, 0
    for nu in range(1, N + 1):
        for ir, (_, Us, _) in enumerate(params):
            koff[(nu, ir)] = Ktot
            Ktot += int(Us[nu - 1].shape[-1])

    # ---- host-side constants (in a real model these are built once at init) --------
    wt_fused = np.zeros((C, E, Ktot), np.float32)             # W[e,k,c] -> [c,e,k]
    ut_np, st_np = [], []
    for nu in range(1, N + 1):
        Pnu, Pprev = dtot * I ** nu, dtot * I ** (nu - 1)
        ut = np.zeros((Ktot, Pnu), np.float32)                # zero-padded block-diag U^T
        st = np.zeros((Pnu, Pprev), np.float32)               # block-diag group-sum over last i
        co = cp = 0
        for ir, (d, Us, Ws) in enumerate(params):
            K = int(Us[nu - 1].shape[-1])
            off = koff[(nu, ir)]
            W = np.asarray(Ws[nu - 1], np.float32)            # (E, K, C)
            wt_fused[:, :, off:off + K] = np.transpose(W, (2, 0, 1))
            U = np.asarray(Us[nu - 1], np.float32).reshape(d * I ** nu, K)
            ut[off:off + K, co:co + d * I ** nu] = U.T
            q = np.arange(d * I ** nu)
            st[co + q, cp + q // I] = 1.0
            co += d * I ** nu
            cp += d * I ** (nu - 1)
        ut_np.append(ut)
        st_np.append(st)
    rep = np.zeros((I, Pmax), np.float32)                     # lane p <- x[..., p % I]
    rep[np.arange(Pmax) % I, np.arange(Pmax)] = 1.0

    # ---- batch blocking -------------------------------------------------------------
    BB = batch_block if batch_block is not None else _pick_batch_block(B, C, I, Ktot, dtot, N)
    assert B % BB == 0, (B, BB)
    grid = (B // BB,)

    x_cm = jnp.transpose(x, (1, 0, 2))                        # (C, B, I) channel-major

    # ---- specs ------------------------------------------------------------------
    def _const_spec(shape):
        nd = len(shape)
        imap = lambda pb, _nd=nd: (0,) * _nd
        try:
            # constants: fetched once, no need for a second pipeline buffer
            return pl.BlockSpec(shape, imap, pipeline_mode=pl.Buffered(1))
        except Exception:
            return pl.BlockSpec(shape, imap)

    in_specs = [
        pl.BlockSpec((BB, E), lambda pb: (pb, 0)),            # y block
        pl.BlockSpec((C, BB, I), lambda pb: (0, pb, 0)),      # x block, channel-major
        _const_spec(rep.shape),
        _const_spec(wt_fused.shape),
    ]
    in_specs += [_const_spec(a.shape) for a in ut_np]
    in_specs += [_const_spec(a.shape) for a in st_np]

    out_specs = pl.BlockSpec((BB, C * dtot), lambda pb: (pb, 0))

    scratch_shapes = [
        pltpu.VMEM((BB * C, Ktot), jnp.float32),              # element-contracted weights
        pltpu.VMEM((BB * C, Pmax), jnp.float32),              # lane-replicated features
    ]

    # ---- advisory cost + explicit VMEM limit ---------------------------------------
    const_bytes = 4 * (rep.size + wt_fused.size +
                       sum(a.size for a in ut_np) + sum(a.size for a in st_np))
    R = B * C
    flops = 2 * R * (E * Ktot + I * Pmax)                     # staging matmuls
    for nu in range(N, 0, -1):
        Pnu, Pprev = dtot * I ** nu, dtot * I ** (nu - 1)
        flops += 2 * R * Ktot * Pnu + 2 * R * Pnu + 2 * R * Pnu * Pprev
    bytes_accessed = 4 * (B * E + B * C * I + B * C * dtot) + grid[0] * const_bytes
    cost = pl.CostEstimate(flops=int(flops), transcendentals=0,
                           bytes_accessed=int(bytes_accessed))

    work_bytes = 4 * BB * C * (Ktot + 4 * Pmax + 2 * dtot) \
        + 8 * 4 * (BB * E + C * BB * I + BB * C * dtot)
    vmem_limit = int(min(64 << 20, max(16 << 20, 2 * (work_bytes + 2 * const_bytes))))

    kernel = _make_kernel(BB, C, I, N, dtot, d_list)

    return pl.pallas_call(
        kernel,
        grid=grid,
        in_specs=in_specs,
        out_specs=out_specs,
        out_shape=jax.ShapeDtypeStruct((B, C * dtot), jnp.float32),
        scratch_shapes=scratch_shapes,
        compiler_params=pltpu.CompilerParams(
            dimension_semantics=("parallel",),
            vmem_limit_bytes=vmem_limit),
        cost_estimate=cost,
    )(y, x_cm, jnp.asarray(rep), jnp.asarray(wt_fused),
      *[jnp.asarray(a) for a in ut_np], *[jnp.asarray(a) for a in st_np])


def symmetric_contraction_ref(x, y, params):
    """Pure-JAX reference (direct transcription of the torch einsum recursion)."""
    outs = []
    for (d_out, Us, Ws) in params:
        N = len(Us)
        out = jnp.einsum('...ik,ekc,bci,be->bc...', Us[-1], Ws[-1], x, y)
        for corr in range(N - 1, 0, -1):
            c_t = jnp.einsum('...k,ekc,be->bc...', Us[corr - 1], Ws[corr - 1], y)
            c_t = c_t + out
            out = jnp.einsum('bc...i,bci->bc...', c_t, x)
        outs.append(out.reshape(out.shape[0], -1))
    return jnp.concatenate(outs, axis=-1)


def init_params(key, irreps_out_dims, k_table, correlation, I, C, E):
    """Deterministic parameter/buffer init mirroring Contraction.__init__ shapes."""
    params = []
    for d_out, Ks in zip(irreps_out_dims, k_table):
        Us, Ws = [], []
        for nu in range(1, correlation + 1):
            K = Ks[nu - 1]
            key, k1, k2 = jax.random.split(key, 3)
            # TODO(synk): U tensors are deterministic synthetic stand-ins for the
            # e3nn Wigner-3j based U_matrix_real buffers (requires e3nn); shapes and
            # contraction structure match the real module.
            U = jax.random.normal(k1, (d_out,) + (I,) * nu + (K,), jnp.float32)
            # torch.randn(num_elements, num_params, num_features) / num_params
            W = jax.random.normal(k2, (E, K, C), jnp.float32) / K
            Us.append(U)
            Ws.append(W)
        params.append((d_out, Us, Ws))
    return params


if __name__ == "__main__":
    # Config: irreps_in = "8x0e + 8x1o" -> num_features C = 8, coupling irreps
    # "0e + 1o" (I = 4); irreps_out = "1x0e + 1x1o"; correlation = 3; 4 elements.
    # B = 16 so the batch splits into 2 blocks (grid=(2,), both TCs busy on v7x).
    B, C, I, E = 16, 8, 4, 4
    correlation = 3
    irreps_out_dims = [1, 3]                 # 0e then 1o
    k_table = [[1, 2, 4], [1, 2, 6]]         # path counts per correlation order

    key = jax.random.PRNGKey(0)
    kx, ky, kp, kw = jax.random.split(key, 4)
    x = jax.random.normal(kx, (B, C, I), jnp.float32)
    elem = jax.random.randint(ky, (B,), 0, E)
    y = jax.nn.one_hot(elem, E, dtype=jnp.float32)

    params = init_params(kp, irreps_out_dims, k_table, correlation, I, C, E)

    out = jax.block_until_ready(symmetric_contraction(x, y, params))
    assert out.shape == (B, C * sum(irreps_out_dims)), out.shape
    assert bool(jnp.all(jnp.isfinite(out)))

    ref = symmetric_contraction_ref(x, y, params)
    rel = float(jnp.linalg.norm(out - ref) / (jnp.linalg.norm(ref) + 1e-30))
    assert rel < 1e-4, f"one-hot mismatch vs reference: rel={rel}"

    # General (non-one-hot) node_attrs: the kernel contracts over the element axis
    # exactly, so weighted species embeddings also match the reference.
    y_soft = jax.nn.softmax(jax.random.normal(kw, (B, E), jnp.float32), axis=-1)
    out2 = jax.block_until_ready(symmetric_contraction(x, y_soft, params))
    ref2 = symmetric_contraction_ref(x, y_soft, params)
    rel2 = float(jnp.linalg.norm(out2 - ref2) / (jnp.linalg.norm(ref2) + 1e-30))
    assert rel2 < 1e-4, f"general node_attrs mismatch vs reference: rel={rel2}"

    print("KERNEL_OK")
</pallas_src>

<mosaic_0001>
module attributes {stable_mosaic.version = 11 : i64} {
  func.func @kernel(%arg0: i32, %arg1: memref<8x4xf32, #tpu.memory_space<vmem>>, %arg2: memref<8x8x4xf32, #tpu.memory_space<vmem>>, %arg3: memref<4x256xf32, #tpu.memory_space<vmem>>, %arg4: memref<8x4x16xf32, #tpu.memory_space<vmem>>, %arg5: memref<16x16xf32, #tpu.memory_space<vmem>>, %arg6: memref<16x64xf32, #tpu.memory_space<vmem>>, %arg7: memref<16x256xf32, #tpu.memory_space<vmem>>, %arg8: memref<16x4xf32, #tpu.memory_space<vmem>>, %arg9: memref<64x16xf32, #tpu.memory_space<vmem>>, %arg10: memref<256x64xf32, #tpu.memory_space<vmem>>, %arg11: memref<8x32xf32, #tpu.memory_space<vmem>>, %arg12: memref<64x16xf32, #tpu.memory_space<vmem>>, %arg13: memref<64x256xf32, #tpu.memory_space<vmem>>) attributes {dimension_semantics = [#tpu.dimension_semantics<parallel>], iteration_bounds = array<i64: 2>, scalar_prefetch = 0 : i64, scratch_operands = 2 : i64, tpu.core_type = #tpu.core_type<tc>, window_params = [{transform_indices = @transform_0, window_bounds = array<i64: 8, 4>}, {transform_indices = @transform_1, window_bounds = array<i64: 8, 8, 4>}, {pipeline_mode = #tpu.pipeline_mode<synchronous>, transform_indices = @transform_2, window_bounds = array<i64: 4, 256>}, {pipeline_mode = #tpu.pipeline_mode<synchronous>, transform_indices = @transform_3, window_bounds = array<i64: 8, 4, 16>}, {pipeline_mode = #tpu.pipeline_mode<synchronous>, transform_indices = @transform_4, window_bounds = array<i64: 16, 16>}, {pipeline_mode = #tpu.pipeline_mode<synchronous>, transform_indices = @transform_5, window_bounds = array<i64: 16, 64>}, {pipeline_mode = #tpu.pipeline_mode<synchronous>, transform_indices = @transform_6, window_bounds = array<i64: 16, 256>}, {pipeline_mode = #tpu.pipeline_mode<synchronous>, transform_indices = @transform_7, window_bounds = array<i64: 16, 4>}, {pipeline_mode = #tpu.pipeline_mode<synchronous>, transform_indices = @transform_8, window_bounds = array<i64: 64, 16>}, {pipeline_mode = #tpu.pipeline_mode<synchronous>, transform_indices = @transform_9, window_bounds = array<i64: 256, 64>}, {transform_indices = @transform_10, window_bounds = array<i64: 8, 32>}]} {
    %c0 = arith.constant 0 : index
    %c0_0 = arith.constant 0 : index
    %0 = vector.load %arg1[%c0, %c0_0] : memref<8x4xf32, #tpu.memory_space<vmem>>, vector<8x4xf32>
    %c0_1 = arith.constant 0 : index
    %c0_2 = arith.constant 0 : index
    %1 = vector.load %arg3[%c0_1, %c0_2] : memref<4x256xf32, #tpu.memory_space<vmem>>, vector<4x256xf32>
    %c0_i32 = arith.constant 0 : i32
    %c8_i32 = arith.constant 8 : i32
    %2 = arith.addi %c0_i32, %c8_i32 : i32
    %c1_i32 = arith.constant 1 : i32
    scf.for %arg14 = %c0_i32 to %2 step %c1_i32  : i32 {
      %c8_i32_27 = arith.constant 8 : i32
      %42 = arith.muli %arg14, %c8_i32_27 : i32
      %43 = tpu.assume_multiple %42, 8 : i32
      %44 = arith.index_cast %arg14 : i32 to index
      %c0_28 = arith.constant 0 : index
      %c0_29 = arith.constant 0 : index
      %45 = vector.load %arg4[%44, %c0_28, %c0_29] : memref<8x4x16xf32, #tpu.memory_space<vmem>>, vector<1x4x16xf32>
      %46 = vector.shape_cast %45 : vector<1x4x16xf32> to vector<4x16xf32>
      %cst_30 = arith.constant dense<0.000000e+00> : vector<8x16xf32>
      %47 = tpu.matmul %0, %46, %cst_30 {dimension_numbers = #tpu.dot_dimension_numbers<[1], [0], [0], [1], [0, 0, 1, 1], [], []>} : vector<8x4xf32>, vector<4x16xf32>, vector<8x16xf32> -> vector<8x16xf32>
      %48 = arith.index_cast %43 : i32 to index
      %c0_31 = arith.constant 0 : index
      %49 = vector.load %arg12[%48, %c0_31] : memref<64x16xf32, #tpu.memory_space<vmem>>, vector<8x16xf32>
      tpu.vector_store %arg12[%48, %c0_31], %47 {strides = array<i32>} : memref<64x16xf32, #tpu.memory_space<vmem>>, vector<8x16xf32>,
      %50 = arith.index_cast %arg14 : i32 to index
      %c0_32 = arith.constant 0 : index
      %c0_33 = arith.constant 0 : index
      %51 = vector.load %arg2[%50, %c0_32, %c0_33] : memref<8x8x4xf32, #tpu.memory_space<vmem>>, vector<1x8x4xf32>
      %52 = vector.shape_cast %51 : vector<1x8x4xf32> to vector<8x4xf32>
      %cst_34 = arith.constant dense<0.000000e+00> : vector<8x256xf32>
      %53 = tpu.matmul %52, %1, %cst_34 {dimension_numbers = #tpu.dot_dimension_numbers<[1], [0], [0], [1], [0, 0, 1, 1], [], []>} : vector<8x4xf32>, vector<4x256xf32>, vector<8x256xf32> -> vector<8x256xf32>
      %54 = arith.index_cast %43 : i32 to index
      %c0_35 = arith.constant 0 : index
      %55 = vector.load %arg13[%54, %c0_35] : memref<64x256xf32, #tpu.memory_space<vmem>>, vector<8x256xf32>
      tpu.vector_store %arg13[%54, %c0_35], %53 {strides = array<i32>} : memref<64x256xf32, #tpu.memory_space<vmem>>, vector<8x256xf32>,
    }
    %c8_i32_3 = arith.constant 8 : i32
    %c0_4 = arith.constant 0 : index
    %c0_5 = arith.constant 0 : index
    %3 = vector.load %arg12[%c0_4, %c0_5] : memref<64x16xf32, #tpu.memory_space<vmem>>, vector<64x16xf32>
    %c0_6 = arith.constant 0 : index
    %c0_7 = arith.constant 0 : index
    %4 = vector.load %arg13[%c0_6, %c0_7] : memref<64x256xf32, #tpu.memory_space<vmem>>, vector<64x256xf32>
    %c0_8 = arith.constant 0 : index
    %c0_9 = arith.constant 0 : index
    %5 = vector.load %arg7[%c0_8, %c0_9] : memref<16x256xf32, #tpu.memory_space<vmem>>, vector<16x256xf32>
    %cst = arith.constant dense<0.000000e+00> : vector<64x256xf32>
    %6 = tpu.matmul %3, %5, %cst {dimension_numbers = #tpu.dot_dimension_numbers<[1], [0], [0], [1], [0, 0, 1, 1], [], []>} : vector<64x16xf32>, vector<16x256xf32>, vector<64x256xf32> -> vector<64x256xf32>
    %7 = arith.mulf %6, %4 : vector<64x256xf32>
    %c0_10 = arith.constant 0 : index
    %c0_11 = arith.constant 0 : index
    %8 = vector.load %arg10[%c0_10, %c0_11] : memref<256x64xf32, #tpu.memory_space<vmem>>, vector<256x64xf32>
    %cst_12 = arith.constant dense<0.000000e+00> : vector<64x64xf32>
    %9 = tpu.matmul %7, %8, %cst_12 {dimension_numbers = #tpu.dot_dimension_numbers<[1], [0], [0], [1], [0, 0, 1, 1], [], []>} : vector<64x256xf32>, vector<256x64xf32>, vector<64x64xf32> -> vector<64x64xf32>
    %c0_13 = arith.constant 0 : index
    %c0_14 = arith.constant 0 : index
    %10 = vector.load %arg6[%c0_13, %c0_14] : memref<16x64xf32, #tpu.memory_space<vmem>>, vector<16x64xf32>
    %cst_15 = arith.constant dense<0.000000e+00> : vector<64x64xf32>
    %11 = tpu.matmul %3, %10, %cst_15 {dimension_numbers = #tpu.dot_dimension_numbers<[1], [0], [0], [1], [0, 0, 1, 1], [], []>} : vector<64x16xf32>, vector<16x64xf32>, vector<64x64xf32> -> vector<64x64xf32>
    %12 = arith.addf %9, %11 : vector<64x64xf32>
    %13 = vector.extract_strided_slice %4 {offsets = [0, 0], sizes = [64, 64], strides = [1, 1]} : vector<64x256xf32> to vector<64x64xf32>
    %14 = arith.mulf %12, %13 : vector<64x64xf32>
    %c0_16 = arith.constant 0 : index
    %c0_17 = arith.constant 0 : index
    %15 = vector.load %arg9[%c0_16, %c0_17] : memref<64x16xf32, #tpu.memory_space<vmem>>, vector<64x16xf32>
    %cst_18 = arith.constant dense<0.000000e+00> : vector<64x16xf32>
    %16 = tpu.matmul %14, %15, %cst_18 {dimension_numbers = #tpu.dot_dimension_numbers<[1], [0], [0], [1], [0, 0, 1, 1], [], []>} : vector<64x64xf32>, vector<64x16xf32>, vector<64x16xf32> -> vector<64x16xf32>
    %c0_19 = arith.constant 0 : index
    %c0_20 = arith.constant 0 : index
    %17 = vector.load %arg5[%c0_19, %c0_20] : memref<16x16xf32, #tpu.memory_space<vmem>>, vector<16x16xf32>
    %cst_21 = arith.constant dense<0.000000e+00> : vector<64x16xf32>
    %18 = tpu.matmul %3, %17, %cst_21 {dimension_numbers = #tpu.dot_dimension_numbers<[1], [0], [0], [1], [0, 0, 1, 1], [], []>} : vector<64x16xf32>, vector<16x16xf32>, vector<64x16xf32> -> vector<64x16xf32>
    %19 = arith.addf %16, %18 : vector<64x16xf32>
    %20 = vector.extract_strided_slice %4 {offsets = [0, 0], sizes = [64, 16], strides = [1, 1]} : vector<64x256xf32> to vector<64x16xf32>
    %21 = arith.mulf %19, %20 : vector<64x16xf32>
    %c0_22 = arith.constant 0 : index
    %c0_23 = arith.constant 0 : index
    %22 = vector.load %arg8[%c0_22, %c0_23] : memref<16x4xf32, #tpu.memory_space<vmem>>, vector<16x4xf32>
    %cst_24 = arith.constant dense<0.000000e+00> : vector<64x4xf32>
    %23 = tpu.matmul %21, %22, %cst_24 {dimension_numbers = #tpu.dot_dimension_numbers<[1], [0], [0], [1], [0, 0, 1, 1], [], []>} : vector<64x16xf32>, vector<16x4xf32>, vector<64x4xf32> -> vector<64x4xf32>
    %24 = vector.extract_strided_slice %23 {offsets = [0, 0], sizes = [8, 1], strides = [1, 1]} : vector<64x4xf32> to vector<8x1xf32>
    %25 = vector.extract_strided_slice %23 {offsets = [8, 0], sizes = [8, 1], strides = [1, 1]} : vector<64x4xf32> to vector<8x1xf32>
    %26 = vector.extract_strided_slice %23 {offsets = [16, 0], sizes = [8, 1], strides = [1, 1]} : vector<64x4xf32> to vector<8x1xf32>
    %27 = vector.extract_strided_slice %23 {offsets = [24, 0], sizes = [8, 1], strides = [1, 1]} : vector<64x4xf32> to vector<8x1xf32>
    %28 = vector.extract_strided_slice %23 {offsets = [32, 0], sizes = [8, 1], strides = [1, 1]} : vector<64x4xf32> to vector<8x1xf32>
    %29 = vector.extract_strided_slice %23 {offsets = [40, 0], sizes = [8, 1], strides = [1, 1]} : vector<64x4xf32> to vector<8x1xf32>
    %30 = vector.extract_strided_slice %23 {offsets = [48, 0], sizes = [8, 1], strides = [1, 1]} : vector<64x4xf32> to vector<8x1xf32>
    %31 = vector.extract_strided_slice %23 {offsets = [56, 0], sizes = [8, 1], strides = [1, 1]} : vector<64x4xf32> to vector<8x1xf32>
    %32 = vector.extract_strided_slice %23 {offsets = [0, 1], sizes = [8, 3], strides = [1, 1]} : vector<64x4xf32> to vector<8x3xf32>
    %33 = vector.extract_strided_slice %23 {offsets = [8, 1], sizes = [8, 3], strides = [1, 1]} : vector<64x4xf32> to vector<8x3xf32>
    %34 = vector.extract_strided_slice %23 {offsets = [16, 1], sizes = [8, 3], strides = [1, 1]} : vector<64x4xf32> to vector<8x3xf32>
    %35 = vector.extract_strided_slice %23 {offsets = [24, 1], sizes = [8, 3], strides = [1, 1]} : vector<64x4xf32> to vector<8x3xf32>
    %36 = vector.extract_strided_slice %23 {offsets = [32, 1], sizes = [8, 3], strides = [1, 1]} : vector<64x4xf32> to vector<8x3xf32>
    %37 = vector.extract_strided_slice %23 {offsets = [40, 1], sizes = [8, 3], strides = [1, 1]} : vector<64x4xf32> to vector<8x3xf32>
    %38 = vector.extract_strided_slice %23 {offsets = [48, 1], sizes = [8, 3], strides = [1, 1]} : vector<64x4xf32> to vector<8x3xf32>
    %39 = vector.extract_strided_slice %23 {offsets = [56, 1], sizes = [8, 3], strides = [1, 1]} : vector<64x4xf32> to vector<8x3xf32>
    %40 = tpu.concatenate %24, %25, %26, %27, %28, %29, %30, %31, %32, %33, %34, %35, %36, %37, %38, %39 in 1 : vector<8x1xf32>, vector<8x1xf32>, vector<8x1xf32>, vector<8x1xf32>, vector<8x1xf32>, vector<8x1xf32>, vector<8x1xf32>, vector<8x1xf32>, vector<8x3xf32>, vector<8x3xf32>, vector<8x3xf32>, vector<8x3xf32>, vector<8x3xf32>, vector<8x3xf32>, vector<8x3xf32>, vector<8x3xf32> -> vector<8x32xf32>
    %c0_25 = arith.constant 0 : index
    %c0_26 = arith.constant 0 : index
    %41 = vector.load %arg11[%c0_25, %c0_26] : memref<8x32xf32, #tpu.memory_space<vmem>>, vector<8x32xf32>
    tpu.vector_store %arg11[%c0_25, %c0_26], %40 {strides = array<i32>} : memref<8x32xf32, #tpu.memory_space<vmem>>, vector<8x32xf32>,
    return
  }
  func.func @transform_0(%arg0: i32) -> (i32, i32) {
    %c0_i32 = arith.constant 0 : i32
    %c0_i32_0 = arith.constant 0 : i32
    return %arg0, %c0_i32 : i32, i32
  }
  func.func @transform_1(%arg0: i32) -> (i32, i32, i32) {
    %c0_i32 = arith.constant 0 : i32
    %c0_i32_0 = arith.constant 0 : i32
    %c0_i32_1 = arith.constant 0 : i32
    return %c0_i32, %arg0, %c0_i32_0 : i32, i32, i32
  }
  func.func @transform_2(%arg0: i32) -> (i32, i32) {
    %c0_i32 = arith.constant 0 : i32
    %c0_i32_0 = arith.constant 0 : i32
    %c0_i32_1 = arith.constant 0 : i32
    return %c0_i32, %c0_i32_0 : i32, i32
  }
  func.func @transform_3(%arg0: i32) -> (i32, i32, i32) {
    %c0_i32 = arith.constant 0 : i32
    %c0_i32_0 = arith.constant 0 : i32
    %c0_i32_1 = arith.constant 0 : i32
    %c0_i32_2 = arith.constant 0 : i32
    return %c0_i32, %c0_i32_0, %c0_i32_1 : i32, i32, i32
  }
  func.func @transform_4(%arg0: i32) -> (i32, i32) {
    %c0_i32 = arith.constant 0 : i32
    %c0_i32_0 = arith.constant 0 : i32
    %c0_i32_1 = arith.constant 0 : i32
    return %c0_i32, %c0_i32_0 : i32, i32
  }
  func.func @transform_5(%arg0: i32) -> (i32, i32) {
    %c0_i32 = arith.constant 0 : i32
    %c0_i32_0 = arith.constant 0 : i32
    %c0_i32_1 = arith.constant 0 : i32
    return %c0_i32, %c0_i32_0 : i32, i32
  }
  func.func @transform_6(%arg0: i32) -> (i32, i32) {
    %c0_i32 = arith.constant 0 : i32
    %c0_i32_0 = arith.constant 0 : i32
    %c0_i32_1 = arith.constant 0 : i32
    return %c0_i32, %c0_i32_0 : i32, i32
  }
  func.func @transform_7(%arg0: i32) -> (i32, i32) {
    %c0_i32 = arith.constant 0 : i32
    %c0_i32_0 = arith.constant 0 : i32
    %c0_i32_1 = arith.constant 0 : i32
    return %c0_i32, %c0_i32_0 : i32, i32
  }
  func.func @transform_8(%arg0: i32) -> (i32, i32) {
    %c0_i32 = arith.constant 0 : i32
    %c0_i32_0 = arith.constant 0 : i32
    %c0_i32_1 = arith.constant 0 : i32
    return %c0_i32, %c0_i32_0 : i32, i32
  }
  func.func @transform_9(%arg0: i32) -> (i32, i32) {
    %c0_i32 = arith.constant 0 : i32
    %c0_i32_0 = arith.constant 0 : i32
    %c0_i32_1 = arith.constant 0 : i32
    return %c0_i32, %c0_i32_0 : i32, i32
  }
  func.func @transform_10(%arg0: i32) -> (i32, i32) {
    %c0_i32 = arith.constant 0 : i32
    %c0_i32_0 = arith.constant 0 : i32
    return %arg0, %c0_i32 : i32, i32
  }
}

</mosaic_0001>

<bundles_post_ra>
// kernel: tpu_custom_call.1
= control target key start
LH: loop header
LB: loop body
LE: loop exit
PB: predicated region body
PF: predicated region fallthrough
CT: control target
= control target key end

     0   :  { %s2488_s0 = inlined_call_operand.vmem [shape: f32[16,4], index: 0, kind: input, shape index: {}]   ;;  %s2489_s1 = inlined_call_operand.vmem [shape: f32[8,16,4], index: 1, kind: input, shape index: {}]   ;;  %s2490_s2 = inlined_call_operand.vmem [shape: f32[4,256], index: 2, kind: input, shape index: {}]   ;;  %s2491_s3 = inlined_call_operand.vmem [shape: f32[8,4,16], index: 3, kind: input, shape index: {}]   ;;  %s2492_s4 = inlined_call_operand.vmem [shape: f32[16,16], index: 4, kind: input, shape index: {}]   ;;  %s2493_s5 = inlined_call_operand.vmem [shape: f32[16,64], index: 5, kind: input, shape index: {}]   ;;  %s2494_s6 = inlined_call_operand.vmem [shape: f32[16,256], index: 6, kind: input, shape index: {}]   ;;  %s2495_s7 = inlined_call_operand.vmem [shape: f32[16,4], index: 7, kind: input, shape index: {}]   ;;  %s2496_s8 = inlined_call_operand.vmem [shape: f32[64,16], index: 8, kind: input, shape index: {}]   ;;  %s2497_s9 = inlined_call_operand.vmem [shape: f32[256,64], index: 9, kind: input, shape index: {}]   ;;  %s2498_s10 = inlined_call_operand.hbm [shape: f32[16,32], index: 10, kind: output, shape index: {}]  }
   0x1   :  { %2499 = sst [smem:[#allocation9_spill]] %s2488_s0 }
   0x2   :  { %2500 = sst [smem:[#allocation10_spill]] %s2489_s1 }
   0x3   :  { %15 = vsyncpa [#allocation6], 0 }
   0x4   :  { %17 = vsyncpa [#allocation6 + $0x1], 0  ;;  %s2082_s13 = smov 0   ;;  %s2084_s14 = smov 0  }
   0x5   :  { %s2086_s15 = smov 0   ;;  %s2088_s16 = smov 0  }
   0x6 LB: > { %s2103_s17 = sadd.s32 4294967295, %s2003_s16   ;;  %s1627_s18 = sadd.s32 4294967294, %s2003_s16   ;;  %s2003_s16 = sphi %s2088_s16, %s2510_s16   ;;  %s1999_s15 = sphi %s2086_s15, %s2509_s15   ;;  %s1995_s14 = sphi %s2084_s14, %s2508_s14   ;;  %s1991_s13 = sphi %s2082_s13, %s2507_s13  }
   0x7   : > { %s2107_s19 = sadd.s32 1, %s2003_s16   ;;  %s56_s20 = sadd.s32 1, %s1999_s15 }
   0x8   : > { %s53_s21 = ssub.s32 %s2003_s16, %s2107_s19  ;;  %p63_p0 = scmp.ne.s32.totalorder %s1999_s15, %s1995_s14 }
   0x9   : > { %p54_p1 = scmp.eq.s32.totalorder %s53_s21, 0  ;;  %p64_p2 = scmp.eq.s32.totalorder %s2003_s16, 0 }
   0xa   : > { %p261_p3 = scmp.eq.s32.totalorder %s2103_s17, 1  ;;  %p266_p4 = scmp.ne.s32.totalorder %s1995_s14, %s1991_s13 }
   0xb   : > { %s2119_s22 = scalar_select %p54_p1, %s1999_s15, %s56_s20  }
   0xc   : > { %p65_p5 = por %p64_p2, %p63_p0  ;;  %p2121_p6 = por %p261_p3, %p63_p0 }
   0xd   : > { %2501 = sst [smem:[#allocation8_spill]] %s2119_s22  ;;  %p267_p7 = scmp.eq.s32.totalorder %s1627_s18, 1 }
   0xe   : > { %p1629_p9 = scmp.ge.s32.totalorder %s2003_s16, 2 }
   0xf   : > { %p2125_p8 = por %p267_p7, %p266_p4 }
  0x10   : > { %307 = sbr.rel (%p1629_p9) target bundleno = 35 (0x23), region = 48 }
  0x15   : > { %317 = sbr.rel (!%p65_p5) target bundleno = 35 (0x23), region = 56  ;;  %s319_s25 = sand.u32 (%p65_p5), 1, %s1999_s15  }
  0x16   : > { %s1631_s26 = sshll.u32 (%p65_p5), %s2003_s16, 3  ;;  %s1630_s27 = sshll.u32 (%p65_p5), %s319_s25, 6 }
  0x17   : > { %s2504_s1 = sld [smem:[#allocation10_spill]] (%p65_p5)  ;;  %s321_s11 = scalar_lea.vmem (%p65_p5), [#allocation4], %s1630_s27 }
  0x1d   : > { %s323_s30 = scalar_lea.vmem %s2504_s1, %s1631_s26 }
  0x1e   : > { %v366_v0 = vld [vmem:[%s323_s30] sm:$0xff]  ;;  %v368_v1 = vld [vmem:[%s323_s30 + $0x10] sm:$0xff] }
  0x1f   : > { %v370_v2 = vld [vmem:[%s323_s30 + $0x20] sm:$0xff]  ;;  %367 = vst [vmem:[%s321_s11] sm:$0xff] %v366_v0  ;;  %369 = vst [vmem:[%s321_s11 + $0x8] sm:$0xff] %v368_v1  ;;  %v372_v3 = vld [vmem:[%s323_s30 + $0x30] sm:$0xff] }
  0x20   : > { %371 = vst [vmem:[%s321_s11 + $0x10] sm:$0xff] %v370_v2  ;;  %v374_v4 = vld [vmem:[%s323_s30 + $0x40] sm:$0xff]  ;;  %v376_v5 = vld [vmem:[%s323_s30 + $0x50] sm:$0xff]  ;;  %373 = vst [vmem:[%s321_s11 + $0x18] sm:$0xff] %v372_v3 }
  0x21   : > { %375 = vst [vmem:[%s321_s11 + $0x20] sm:$0xff] %v374_v4  ;;  %377 = vst [vmem:[%s321_s11 + $0x28] sm:$0xff] %v376_v5  ;;  %v378_v6 = vld [vmem:[%s323_s30 + $0x60] sm:$0xff]  ;;  %v380_v7 = vld [vmem:[%s323_s30 + $0x70] sm:$0xff] }
  0x22   : > { %379 = vst [vmem:[%s321_s11 + $0x30] sm:$0xff] %v378_v6  ;;  %381 = vst [vmem:[%s321_s11 + $0x38] sm:$0xff] %v380_v7 }
  0x23 PF: > { %p1632_p10 = scmp.ge.s32.totalorder %s2003_s16, 1  ;;  %p386_p11 = scmp.lt.s32.totalorder %s2003_s16, 3 }
  0x25   : > { %p387_p12 = pnand %p1632_p10, %p386_p11 }
  0x26   : > { %s2140_s12 = sand.u32 (!%p387_p12), 1, %s1995_s14   ;;  %p434_p13 = scmp.lt.s32.totalorder (!%p387_p12), %s2103_s17, 1 }
  0x27   : > { %390 = sbr.rel (%p387_p12) target bundleno = 1214 (0x4be), region = 94  ;;  %s1633_s21 = sshll.u32 (!%p387_p12), %s2140_s12, 6 }
  0x28   : > { %s1634_s25 = sshll.u32 (!%p387_p12), %s2140_s12, 3  ;;  %s2505_s0 = sld [smem:[#allocation9_spill]] (!%p387_p12) }
  0x29   : > { %s2152_s11 = scalar_lea.vmem (!%p387_p12), [#allocation4], %s1633_s21  ;;  %s2154_s1 = scalar_lea.vmem (!%p387_p12), [#allocation5], %s1634_s25 }
  0x2a   : > { %s2156_s22 = smov (!%p387_p12), 0  }
  0x2c   : > { %v439_v8 = vld [vmem:[%s2490_s2] sm:$0xff]  ;;  %s435_s26 = scalar_select %p434_p13, %s2103_s17, 1 }
  0x2e   : > { %s1635_s27 = sshll.u32 %s435_s26, 3 }
  0x2f   : > { %s437_s30 = scalar_lea.vmem %s2505_s0, %s1635_s27 }
  0x30   : > { %v438_v9 = vld [vmem:[%s437_s30] sm:$0xff] }
  0x31 LB: >> { %vm454_vm0 = vcmask 1043456   ;;  %v534_v10 = vcombine.high %v439_v8, %v439_v8  ;;  %v2009_v11 = vmov 0.0   ;;  %s1636_s18 = sshll.u32 %s2007_s22, 3  ;;  %s1637_s20 = sshll.u32 %s2007_s22, 2  ;;  %vm2010_vm1 = vmmov 0   ;;  %s2007_s22 = sphi %s2156_s22, %s445_s22  }
  0x32   : >> { %1794 = vmatprep.subr.mxu0 %v2009_v11  ;;  %606 = vmatprep.mubr.f32.mxu1 %v2009_v11  ;;  %vm450_vm2 = vcmask 31744   ;;  %s448_s26 = scalar_lea.vmem %s2491_s3, %s1637_s20  ;;  %s531_s27 = scalar_lea.vmem %s2152_s11, %s1636_s18 [#allocation4]  ;;  %vm529_vm3 = vcmask 130048  }
  0x33   : >> { %1640 = vmatprep.subr.msk.mxu1 %vm454_vm0, %v534_v10  ;;  %1796 = vmatprep.mubr.msk.f32.mxu0 %vm2010_vm1, %v2009_v11  ;;  %v449_v12 = vld [vmem:[%s448_s26] sm:$0xf]  ;;  %s613_s28 = sshra.s32 %s1636_s18, 3  ;;  %s528_s0 = scalar_lea.vmem [#allocation2], %s1636_s18 }
  0x34   : >> { %1641 = vmatpush1.msk.msra.mxu1 %vm454_vm0, %v439_v8  ;;  %v532_v13 = vld [vmem:[%s531_s27] sm:$0xff]  ;;  %1795 = vmatpush3.msk.msra.mxu0 %vm454_vm0, %v449_v12  ;;  %s1689_s29 = sshll.u32 %s613_s28, 4  ;;  %s445_s22 = sadd.s32 1, %s2007_s22  }
  0x35   : >> { %1642 = vmatmul.mubr.msk.f32.vlgmr.msra.gmra.mxu1 %vm450_vm2, %v532_v13  ;;  %1797 = vmatmul.mubr.msk.f32.vlgmr.msra.gmra.mxu0 %vm450_vm2, %v438_v9  ;;  %s617_s30 = scalar_lea.vmem [#allocation3], %s1689_s29  ;;  %p442_p0 = scmp.ge.s32.totalorder %s445_s22, 8  }
  0x36   : > { %v647_v18 = vld [vmem:[%s2494_s6 + $0x18] sm:$0xff] (%p442_p0)  ;;  %v646_v19 = vld [vmem:[%s2494_s6 + $0x10] sm:$0xff] (%p442_p0)  ;;  %v645_v20 = vld [vmem:[%s2494_s6 + $0x8] sm:$0xff] (%p442_p0)  ;;  %v2011_v22 = vmov (%p442_p0), 0.0   ;;  %vm1169_vm4 = vcmask (%p442_p0), 523264   ;;  %s2012_s18 = smov (%p442_p0), 1  }
  0x37   : > { %701 = vmatprep.subr.mxu0 (%p442_p0), %v647_v18  ;;  %v644_v21 = vld [vmem:[%s2494_s6] sm:$0xff] (%p442_p0)  ;;  %737 = vmatprep.mubr.f32.mxu0 (%p442_p0), %v2011_v22  ;;  %v833_v24 = vld [vmem:[%s2497_s9 + $0xf8] sm:$0xff] (%p442_p0)  ;;  %v832_v26 = vld [vmem:[%s2497_s9 + $0xf0] sm:$0xff] (%p442_p0)  ;;  %s2013_s27 = smov (%p442_p0), 7   ;;  %s2015_s28 = smov (%p442_p0), 16   ;;  %vm1491_vm5 = vcmask (%p442_p0), 7168  }
  0x38   : > { %702 = vmatpush1.msra.mxu0 (%p442_p0), %v646_v19  ;;  %v817_v25 = vld [vmem:[%s2497_s9 + $0x78] sm:$0xff] (%p442_p0)  ;;  %v816_v27 = vld [vmem:[%s2497_s9 + $0x70] sm:$0xff] (%p442_p0)  ;;  %v831_v29 = vld [vmem:[%s2497_s9 + $0xe8] sm:$0xff] (%p442_p0)  ;;  %s2016_s22 = smov (%p442_p0), 3   ;;  %s2017_s11 = smov (%p442_p0), 13   ;;  %vm1493_vm6 = vcmask (%p442_p0), 15360  }
  0x39   : > { %703 = vmatprep.subr.mxu0 (%p442_p0), %v645_v20  ;;  %v815_v30 = vld [vmem:[%s2497_s9 + $0x68] sm:$0xff] (%p442_p0)  ;;  %v830_v31 = vld [vmem:[%s2497_s9 + $0xe0] sm:$0xff] (%p442_p0)  ;;  %v829_v34 = vld [vmem:[%s2497_s9 + $0xd8] sm:$0xff] (%p442_p0)  ;;  %s2018_s29 = smov (%p442_p0), 2   ;;  %s2020_s20 = smov (%p442_p0), 4   ;;  %vm1495_vm7 = vcmask (%p442_p0), 23552  }
  0x3a   : > { %704 = vmatpush1.msra.mxu0 (%p442_p0), %v644_v21  ;;  %v814_v32 = vld [vmem:[%s2497_s9 + $0x60] sm:$0xff] (%p442_p0)  ;;  %v813_v35 = vld [vmem:[%s2497_s9 + $0x58] sm:$0xff] (%p442_p0)  ;;  %v828_v36 = vld [vmem:[%s2497_s9 + $0xd0] sm:$0xff] (%p442_p0)  ;;  %s2021_s21 = smov (%p442_p0), 6   ;;  %s2022_s25 = smov (%p442_p0), 22   ;;  %vm1499_vm8 = vcmask (%p442_p0), 39936  }
  0x3b   : > { %1702 = vmatprep.subr.mxu0 (%p442_p0), %v833_v24  ;;  %v812_v37 = vld [vmem:[%s2497_s9 + $0x50] sm:$0xff] (%p442_p0)  ;;  %v827_v39 = vld [vmem:[%s2497_s9 + $0xc8] sm:$0xff] (%p442_p0)  ;;  %v826_v41 = vld [vmem:[%s2497_s9 + $0xc0] sm:$0xff] (%p442_p0)  ;;  %s2023_s26 = smov (%p442_p0), 19   ;;  %vm1501_vm9 = vcmask (%p442_p0), 48128   ;;  %vm1503_vm10 = vcmask (%p442_p0), 56320  }
  0x3c   : > { %v811_v40 = vld [vmem:[%s2497_s9 + $0x48] sm:$0xff] (%p442_p0)  ;;  %v810_v42 = vld [vmem:[%s2497_s9 + $0x40] sm:$0xff] (%p442_p0)  ;;  %v825_v44 = vld [vmem:[%s2497_s9 + $0xb8] sm:$0xff] (%p442_p0)  ;;  %vm1505_vm11 = vcmask (%p442_p0), 64512   ;;  %vm1507_vm12 = vcmask (%p442_p0), 89088   ;;  %vm1509_vm13 = vcmask (%p442_p0), 113664  }
  0x3d   : > { %v809_v45 = vld [vmem:[%s2497_s9 + $0x38] sm:$0xff] (%p442_p0)  ;;  %v824_v46 = vld [vmem:[%s2497_s9 + $0xb0] sm:$0xff] (%p442_p0)  ;;  %v823_v49 = vld [vmem:[%s2497_s9 + $0xa8] sm:$0xff] (%p442_p0)  ;;  %vm1511_vm14 = vcmask (%p442_p0), 138240   ;;  %vm1513_vm15 = vcmask (%p442_p0), 162816   ;;  %vm1515_vm0 = vcmask (%p442_p0), 187392  }
  0x3e   : > { %v808_v47 = vld [vmem:[%s2497_s9 + $0x30] sm:$0xff] (%p442_p0)  ;;  %v807_v50 = vld [vmem:[%s2497_s9 + $0x28] sm:$0xff] (%p442_p0)  ;;  %v822_v51 = vld [vmem:[%s2497_s9 + $0xa0] sm:$0xff] (%p442_p0)  ;;  %vm1517_vm1 = vcmask (%p442_p0), 211968  }
  0x3f   : > { %v806_v52 = vld [vmem:[%s2497_s9 + $0x20] sm:$0xff] (%p442_p0)  ;;  %v821_v54 = vld [vmem:[%s2497_s9 + $0x98] sm:$0xff] (%p442_p0)  ;;  %v820_v56 = vld [vmem:[%s2497_s9 + $0x90] sm:$0xff] (%p442_p0) }
  0x40   : > { %v805_v55 = vld [vmem:[%s2497_s9 + $0x18] sm:$0xff] (%p442_p0)  ;;  %v804_v58 = vld [vmem:[%s2497_s9 + $0x10] sm:$0xff] (%p442_p0)  ;;  %v819_v59 = vld [vmem:[%s2497_s9 + $0x88] sm:$0xff] (%p442_p0) }
  0x41   : > { %v803_v60 = vld [vmem:[%s2497_s9 + $0x8] sm:$0xff] (%p442_p0)  ;;  %v818_v61 = vld [vmem:[%s2497_s9 + $0x80] sm:$0xff] (%p442_p0)  ;;  %v1061_v3 = vld [vmem:[%s2496_s8 + $0x38] sm:$0xff] (%p442_p0) }
  0x42   : > { %v835_v62 = vld [vmem:[%s2493_s5 + $0x8] sm:$0xff] (%p442_p0)  ;;  %v802_v63 = vld [vmem:[%s2497_s9] sm:$0xff] (%p442_p0)  ;;  %v1060_v4 = vld [vmem:[%s2496_s8 + $0x30] sm:$0xff] (%p442_p0) }
  0x43   : > { %1799 = vmatprep.subr.mxu1 (%p442_p0), %v835_v62  ;;  %v834_v0 = vld [vmem:[%s2493_s5] sm:$0xff] (%p442_p0)  ;;  %v1063_v1 = vld [vmem:[%s2492_s4 + $0x8] sm:$0xff] (%p442_p0) }
  0x44   : > { %1800 = vmatpush3.msra.mxu1 (%p442_p0), %v835_v62  ;;  %v1062_v2 = vld [vmem:[%s2492_s4] sm:$0xff] (%p442_p0) }
  0x45   : > { %1801 = vmatprep.subr.mxu1 (%p442_p0), %v834_v0 }
  0x46   : > { %1802 = vmatpush3.msra.mxu1 (%p442_p0), %v834_v0 }
  0x47   : > { %1815 = vmatprep.subr.mxu1 (%p442_p0), %v1063_v1 }
  0xf4   : > { %444 = sbr.rel (!%p442_p0) target bundleno = 49 (0x31), region = 152 }
  0xf5   : >> { %v608_v14 = vpop.f32.mrf.mxu1  ;;  %v524_v15 = vpop.f32.mrf.mxu0 }
  0xf6   : >> { %618 = vst [vmem:[%s617_s30] sm:$0xff] %v608_v14  ;;  %530 = vst.msk [vmem:[%s528_s0] sm:$0xff] %vm529_vm3, %v524_v15  ;;  %s2014_s0 = smov (%p442_p0), 10  }
  0xf7   : >> { %v610_v16 = vpop.f32.mrf.mxu1  ;;  %v1798_v17 = vpop.f32.mrf.mxu0 }
  0xf8   : >> { %619 = vst [vmem:[%s617_s30 + $0x8] sm:$0xff] %v610_v16  ;;  %s2019_s30 = smov (%p442_p0), 5  }
  0xfd   : > { %v2189_v23 = vld [vmem:[#allocation2] sm:$0xff]  ;;  %v2208_v28 = vld [vmem:[#allocation2 + $0x8] sm:$0xff]  ;;  %v2225_v33 = vld [vmem:[#allocation2 + $0x10] sm:$0xff] }
  0xfe   : > { %1803 = vmatprep.mubr.msk.f32.mxu1 %vm529_vm3, %v2189_v23  ;;  %1645 = vmatmul.mubr.msk.f32.vlgmr.msra.gmra.mxu0 %vm529_vm3, %v2189_v23  ;;  %v2242_v38 = vld [vmem:[#allocation2 + $0x18] sm:$0xff]  ;;  %v2259_v43 = vld [vmem:[#allocation2 + $0x20] sm:$0xff]  ;;  %v2276_v48 = vld [vmem:[#allocation2 + $0x28] sm:$0xff] }
  0xff   : > { %743 = vmatprep.mubr.f32.mxu0 %v2011_v22  ;;  %1703 = vmatpush3.msra.mxu0 %v817_v25  ;;  %v626_v53 = vld [vmem:[#allocation2 + $0x30] sm:$0xff]  ;;  %v627_v57 = vld [vmem:[#allocation2 + $0x38] sm:$0xff]  ;;  %v629_v6 = vld [vmem:[#allocation3 + $0x8] sm:$0xff] }
 0x100   : > { %1704 = vmatprep.subr.mxu0 %v832_v26  ;;  %1804 = vmatmul.mubr.msk.f32.vlgmr.msra.gmra.mxu1 %vm529_vm3, %v2208_v28  ;;  %v2364_v7 = vld [vmem:[#allocation3] sm:$0xff]  ;;  %v631_v12 = vld [vmem:[#allocation3 + $0x18] sm:$0xff]  ;;  %v2367_v13 = vld [vmem:[#allocation3 + $0x10] sm:$0xff] }
 0x101   : > { %1705 = vmatpush3.msra.mxu0 %v816_v27  ;;  %1806 = vmatprep.mubr.msk.f32.mxu1 %vm529_vm3, %v2225_v33  ;;  %v633_v18 = vld [vmem:[#allocation3 + $0x28] sm:$0xff]  ;;  %v2370_v19 = vld [vmem:[#allocation3 + $0x20] sm:$0xff]  ;;  %v635_v24 = vld [vmem:[#allocation3 + $0x38] sm:$0xff] }
 0x102   : > { %1646 = vmatmul.mubr.msk.f32.gmra.mxu0 %vm529_vm3, %v2208_v28  ;;  %1706 = vmatprep.subr.mxu0 %v831_v29  ;;  %v2373_v25 = vld [vmem:[#allocation3 + $0x30] sm:$0xff] }
 0x103   : > { %749 = vmatprep.mubr.f32.mxu0 %v2011_v22  ;;  %1707 = vmatpush3.msra.mxu0 %v815_v30  ;;  %v637_v30 = vld [vmem:[#allocation3 + $0x48] sm:$0xff] }
 0x104   : > { %1708 = vmatprep.subr.mxu0 %v830_v31  ;;  %1807 = vmatmul.mubr.msk.f32.gmra.mxu1 %vm529_vm3, %v2242_v38  ;;  %v2376_v31 = vld [vmem:[#allocation3 + $0x40] sm:$0xff] }
 0x105   : > { %1709 = vmatpush3.msra.mxu0 %v814_v32  ;;  %1809 = vmatprep.mubr.msk.f32.mxu1 %vm529_vm3, %v2259_v43 }
 0x106   : > { %1647 = vmatmul.mubr.msk.f32.gmra.mxu0 %vm529_vm3, %v2225_v33  ;;  %1710 = vmatprep.subr.mxu0 %v829_v34 }
 0x107   : > { %755 = vmatprep.mubr.f32.mxu0 %v2011_v22  ;;  %1711 = vmatpush3.msra.mxu0 %v813_v35 }
 0x108   : > { %1712 = vmatprep.subr.mxu0 %v828_v36  ;;  %1810 = vmatmul.mubr.msk.f32.gmra.mxu1 %vm529_vm3, %v2276_v48  ;;  %v639_v36 = vld [vmem:[#allocation3 + $0x58] sm:$0xff] }
 0x109   : > { %1713 = vmatpush3.msra.mxu0 %v812_v37  ;;  %1812 = vmatprep.mubr.msk.f32.mxu1 %vm529_vm3, %v626_v53  ;;  %v2379_v37 = vld [vmem:[#allocation3 + $0x50] sm:$0xff] }
 0x10a   : > { %1648 = vmatmul.mubr.msk.f32.gmra.mxu0 %vm529_vm3, %v2242_v38  ;;  %1714 = vmatprep.subr.mxu0 %v827_v39 }
 0x10b   : > { %761 = vmatprep.mubr.f32.mxu0 %v2011_v22  ;;  %1715 = vmatpush3.msra.mxu0 %v811_v40 }
 0x10c   : > { %1716 = vmatprep.subr.mxu0 %v826_v41  ;;  %1813 = vmatmul.mubr.msk.f32.gmra.mxu1 %vm529_vm3, %v627_v57 }
 0x10d   : > { %1717 = vmatpush3.msra.mxu0 %v810_v42  ;;  %1819 = vmatprep.mubr.msk.f32.mxu1 %vm529_vm3, %v2189_v23  ;;  %v641_v42 = vld [vmem:[#allocation3 + $0x68] sm:$0xff] }
 0x10e   : > { %1649 = vmatmul.mubr.msk.f32.gmra.mxu0 %vm529_vm3, %v2259_v43  ;;  %1718 = vmatprep.subr.mxu0 %v825_v44 }
 0x10f   : > { %767 = vmatprep.mubr.f32.mxu0 %v2011_v22  ;;  %1719 = vmatpush3.msra.mxu0 %v809_v45 }
 0x110   : > { %1720 = vmatprep.subr.mxu0 %v824_v46  ;;  %1816 = vmatpush3.msra.mxu1 %v1063_v1 }
 0x111   : > { %1721 = vmatpush3.msra.mxu0 %v808_v47  ;;  %1817 = vmatprep.subr.mxu1 %v1062_v2 }
 0x112   : > { %1650 = vmatmul.mubr.msk.f32.gmra.mxu0 %vm529_vm3, %v2276_v48  ;;  %1722 = vmatprep.subr.mxu0 %v823_v49  ;;  %v2385_v49 = vld [vmem:[#allocation3 + $0x70] sm:$0xff] }
 0x113   : > { %773 = vmatprep.mubr.f32.mxu0 %v2011_v22  ;;  %1723 = vmatpush3.msra.mxu0 %v807_v50 }
 0x114   : > { %1724 = vmatprep.subr.mxu0 %v822_v51  ;;  %1818 = vmatpush3.msra.mxu1 %v1062_v2 }
 0x115   : > { %1725 = vmatpush3.msra.mxu0 %v806_v52  ;;  %1820 = vmatmul.mubr.msk.f32.vlgmr.msra.gmra.mxu1 %vm529_vm3, %v2208_v28 }
 0x116   : > { %1651 = vmatmul.mubr.msk.f32.gmra.mxu0 %vm529_vm3, %v626_v53  ;;  %1726 = vmatprep.subr.mxu0 %v821_v54  ;;  %v1058_v54 = vld [vmem:[%s2496_s8 + $0x20] sm:$0xff] }
 0x117   : > { %779 = vmatprep.mubr.f32.mxu0 %v2011_v22  ;;  %1727 = vmatpush3.msra.mxu0 %v805_v55  ;;  %v1057_v55 = vld [vmem:[%s2496_s8 + $0x18] sm:$0xff] }
 0x118   : > { %1728 = vmatprep.subr.mxu0 %v820_v56  ;;  %1831 = vmatprep.subr.mxu1 %v1061_v3  ;;  %v1056_v56 = vld [vmem:[%s2496_s8 + $0x10] sm:$0xff] }
 0x119   : > { %1729 = vmatpush3.msra.mxu0 %v804_v58  ;;  %1832 = vmatpush3.msra.mxu1 %v1061_v3  ;;  %v1054_v58 = vld [vmem:[%s2496_s8] sm:$0xff] }
 0x11a   : > { %1652 = vmatmul.mubr.msk.f32.gmra.mxu0 %vm529_vm3, %v627_v57  ;;  %1730 = vmatprep.subr.mxu0 %v819_v59  ;;  %v1308_v59 = vld [vmem:[%s2495_s7 + $0x8] sm:$0xff] }
 0x11b   : > { %1731 = vmatpush3.msra.mxu0 %v803_v60  ;;  %1822 = vmatprep.mubr.msk.f32.mxu1 %vm529_vm3, %v2225_v33 }
 0x11c   : > { %1732 = vmatprep.subr.mxu0 %v818_v61  ;;  %1833 = vmatprep.subr.mxu1 %v1060_v4 }
 0x11d   : > { %1733 = vmatpush3.msra.mxu0 %v802_v63  ;;  %1834 = vmatpush3.msra.mxu1 %v1060_v4 }
 0x11e   : > { %1823 = vmatmul.mubr.msk.f32.gmra.mxu1 %vm529_vm3, %v2242_v38 }
 0x11f   : > { %1825 = vmatprep.mubr.msk.f32.mxu1 %vm529_vm3, %v2259_v43  ;;  %v2382_v43 = vld [vmem:[#allocation3 + $0x60] sm:$0xff] }
 0x122   : > { %1826 = vmatmul.mubr.msk.f32.gmra.mxu1 %vm529_vm3, %v2276_v48  ;;  %v643_v48 = vld [vmem:[#allocation3 + $0x78] sm:$0xff] }
 0x123   : > { %1828 = vmatprep.mubr.msk.f32.mxu1 %vm529_vm3, %v626_v53  ;;  %v1059_v53 = vld [vmem:[%s2496_s8 + $0x28] sm:$0xff] }
 0x124   : > { %1835 = vmatprep.subr.mxu1 %v1059_v53 }
 0x125   : > { %1836 = vmatpush3.msra.mxu1 %v1059_v53 }
 0x126   : > { %1829 = vmatmul.mubr.msk.f32.gmra.mxu1 %vm529_vm3, %v627_v57  ;;  %1837 = vmatprep.subr.mxu1 %v1058_v54  ;;  %v1055_v57 = vld [vmem:[%s2496_s8 + $0x8] sm:$0xff] }
 0x127   : > { %1838 = vmatpush3.msra.mxu1 %v1058_v54 }
 0x128   : > { %1839 = vmatprep.subr.mxu1 %v1057_v55 }
 0x129   : > { %1840 = vmatpush3.msra.mxu1 %v1057_v55 }
 0x12a   : > { %1841 = vmatprep.subr.mxu1 %v1056_v56 }
 0x12b   : > { %1842 = vmatpush3.msra.mxu1 %v1056_v56 }
 0x12c   : > { %1843 = vmatprep.subr.mxu1 %v1055_v57 }
 0x12d   : > { %1844 = vmatpush3.msra.mxu1 %v1055_v57 }
 0x12e   : > { %1845 = vmatprep.subr.mxu1 %v1054_v58 }
 0x12f   : > { %1846 = vmatpush3.msra.mxu1 %v1054_v58 }
 0x130   : > { %1859 = vmatprep.subr.mxu1 %v1308_v59 }
 0x1be   : > { %v739_v5 = vpop.f32.mrf.mxu0 }
 0x1bf   : > { %v786_v10 = vmul.f32 %v739_v5, %v2364_v7 }
 0x1c0   : > { %v741_v8 = vpop.f32.mrf.mxu0  ;;  %v1805_v60 = vpop.f32.mrf.mxu1 }
 0x1c1   : > { %v787_v9 = vmul.f32 %v741_v8, %v629_v6 }
 0x1c2   : > { %v745_v11 = vpop.f32.mrf.mxu0  ;;  %v902_v63 = vpop.f32.mrf.mxu1 }
 0x1c3   : > { %1005 = vmatprep.mubr.f32.mxu0 %v787_v9  ;;  %v788_v16 = vmul.f32 %v745_v11, %v2367_v13 }
 0x1c4   : > { %v747_v14 = vpop.f32.mrf.mxu0  ;;  %1006 = vmatmul.mubr.f32.vlgmr.msra.gmra.mxu0 %v786_v10  ;;  %v1808_v4 = vpop.f32.mrf.mxu1 }
 0x1c5   : > { %v789_v15 = vmul.f32 %v747_v14, %v631_v12 }
 0x1c6   : > { %v751_v17 = vpop.f32.mrf.mxu0  ;;  %v912_v11 = vpop.f32.mrf.mxu1 }
 0x1c7   : > { %1010 = vmatprep.mubr.f32.mxu0 %v789_v15  ;;  %v790_v22 = vmul.f32 %v751_v17, %v2370_v19 }
 0x1c8   : > { %v753_v20 = vpop.f32.mrf.mxu0  ;;  %1011 = vmatmul.mubr.f32.gmra.mxu0 %v788_v16 }
 0x1c9   : > { %v791_v21 = vmul.f32 %v753_v20, %v633_v18  ;;  %v1811_v18 = vpop.f32.mrf.mxu1 }
 0x1ca   : > { %v757_v23 = vpop.f32.mrf.mxu0 }
 0x1cb   : > { %1015 = vmatprep.mubr.f32.mxu0 %v791_v21  ;;  %v792_v28 = vmul.f32 %v757_v23, %v2373_v25 }
 0x1cc   : > { %v759_v26 = vpop.f32.mrf.mxu0  ;;  %1016 = vmatmul.mubr.f32.gmra.mxu0 %v790_v22 }
 0x1cd   : > { %v793_v27 = vmul.f32 %v759_v26, %v635_v24  ;;  %v922_v26 = vpop.f32.mrf.mxu1 }
 0x1ce   : > { %v763_v29 = vpop.f32.mrf.mxu0 }
 0x1cf   : > { %1020 = vmatprep.mubr.f32.mxu0 %v793_v27  ;;  %v794_v34 = vmul.f32 %v763_v29, %v2376_v31 }
 0x1d0   : > { %v765_v32 = vpop.f32.mrf.mxu0  ;;  %1021 = vmatmul.mubr.f32.gmra.mxu0 %v792_v28 }
 0x1d1   : > { %v795_v33 = vmul.f32 %v765_v32, %v637_v30 }
 0x1d2   : > { %v769_v35 = vpop.f32.mrf.mxu0 }
 0x1d3   : > { %1025 = vmatprep.mubr.f32.mxu0 %v795_v33  ;;  %v796_v40 = vmul.f32 %v769_v35, %v2379_v37  ;;  %v1814_v33 = vpop.f32.mrf.mxu1 }
 0x1d4   : > { %v771_v38 = vpop.f32.mrf.mxu0  ;;  %1026 = vmatmul.mubr.f32.gmra.mxu0 %v794_v34 }
 0x1d5   : > { %v797_v39 = vmul.f32 %v771_v38, %v639_v36 }
 0x1d6   : > { %v775_v41 = vpop.f32.mrf.mxu0 }
 0x1d7   : > { %1030 = vmatprep.mubr.f32.mxu0 %v797_v39  ;;  %v798_v46 = vmul.f32 %v775_v41, %v2382_v43 }
 0x1d8   : > { %v777_v44 = vpop.f32.mrf.mxu0  ;;  %1031 = vmatmul.mubr.f32.gmra.mxu0 %v796_v40  ;;  %v932_v40 = vpop.f32.mrf.mxu1 }
 0x1d9   : > { %v799_v45 = vmul.f32 %v777_v44, %v641_v42 }
 0x1da   : > { %v781_v47 = vpop.f32.mrf.mxu0  ;;  %v1821_v53 = vpop.f32.mrf.mxu1 }
 0x1db   : > { %1035 = vmatprep.mubr.f32.mxu0 %v799_v45  ;;  %v800_v52 = vmul.f32 %v781_v47, %v2385_v49 }
 0x1dc   : > { %v783_v50 = vpop.f32.mrf.mxu0  ;;  %1036 = vmatmul.mubr.f32.gmra.mxu0 %v798_v46  ;;  %v1130_v54 = vpop.f32.mrf.mxu1 }
 0x1dd   : > { %v801_v51 = vmul.f32 %v783_v50, %v643_v48 }
 0x1de   : > { %v1824_v55 = vpop.f32.mrf.mxu1 }
 0x1df   : > { %1040 = vmatprep.mubr.f32.mxu0 %v801_v51 }
 0x1e0   : > { %1041 = vmatmul.mubr.f32.gmra.mxu0 %v800_v52  ;;  %v1307_v52 = vld [vmem:[%s2495_s7] sm:$0xff]  ;;  %v1140_v56 = vpop.f32.mrf.mxu1 }
 0x1e2   : > { %v1827_v57 = vpop.f32.mrf.mxu1 }
 0x1e4   : > { %v1150_v58 = vpop.f32.mrf.mxu1 }
 0x284   : > { %v1734_v61 = vpop.f32.mrf.mxu0 }
 0x286   : > { %v1735_v62 = vpop.f32.mrf.mxu0 }
 0x287   : > { %v1736_v0 = vadd.f32 %v1735_v62, %v1734_v61 }
 0x288   : > { %v1737_v1 = vpop.f32.mrf.mxu0 }
 0x289   : > { %v1008_v2 = vadd.f32 %v1736_v0, %v902_v63 }
 0x28a   : > { %v1738_v3 = vpop.f32.mrf.mxu0 }
 0x28b   : > { %v1046_v5 = vmul.f32 %v1008_v2, %v2364_v7  ;;  %v1739_v6 = vadd.f32 %v1738_v3, %v1737_v1 }
 0x28c   : > { %v1740_v8 = vpop.f32.mrf.mxu0 }
 0x28d   : > { %v1013_v9 = vadd.f32 %v1805_v60, %v1739_v6  ;;  %1847 = vmatprep.mubr.msk.f32.mxu1 %vm1169_vm4, %v1046_v5 }
 0x28e   : > { %v1741_v10 = vpop.f32.mrf.mxu0 }
 0x28f   : > { %v1047_v12 = vmul.f32 %v1013_v9, %v2367_v13  ;;  %v1742_v14 = vadd.f32 %v1741_v10, %v1740_v8 }
 0x290   : > { %v1743_v15 = vpop.f32.mrf.mxu0 }
 0x291   : > { %v1018_v16 = vadd.f32 %v1742_v14, %v912_v11  ;;  %1848 = vmatmul.mubr.msk.f32.vlgmr.msra.gmra.mxu1 %vm1169_vm4, %v1047_v12 }
 0x292   : > { %v1744_v17 = vpop.f32.mrf.mxu0  ;;  %1860 = vmatpush3.msra.mxu1 %v1308_v59  ;;  %v1830_v59 = vpop.f32.mrf.mxu1 }
 0x293   : > { %v1048_v20 = vmul.f32 %v1018_v16, %v2370_v19  ;;  %v1745_v21 = vadd.f32 %v1744_v17, %v1743_v15  ;;  %1861 = vmatprep.subr.mxu1 %v1307_v52 }
 0x294   : > { %v1746_v22 = vpop.f32.mrf.mxu0  ;;  %1862 = vmatpush3.msra.mxu1 %v1307_v52  ;;  %v1160_v60 = vpop.f32.mrf.mxu1 }
 0x295   : > { %v1023_v23 = vadd.f32 %v1808_v4, %v1745_v21  ;;  %1850 = vmatprep.mubr.msk.f32.mxu1 %vm1169_vm4, %v1048_v20 }
 0x296   : > { %v1747_v24 = vpop.f32.mrf.mxu0 }
 0x297   : > { %v1049_v27 = vmul.f32 %v1023_v23, %v2373_v25  ;;  %v1748_v28 = vadd.f32 %v1747_v24, %v1746_v22 }
 0x298   : > { %v1749_v29 = vpop.f32.mrf.mxu0 }
 0x299   : > { %v1028_v30 = vadd.f32 %v1748_v28, %v922_v26  ;;  %1851 = vmatmul.mubr.msk.f32.gmra.mxu1 %vm1169_vm4, %v1049_v27 }
 0x29a   : > { %v1750_v32 = vpop.f32.mrf.mxu0 }
 0x29b   : > { %v1050_v34 = vmul.f32 %v1028_v30, %v2376_v31  ;;  %v1751_v35 = vadd.f32 %v1750_v32, %v1749_v29 }
 0x29c   : > { %v1752_v36 = vpop.f32.mrf.mxu0 }
 0x29d   : > { %v1033_v38 = vadd.f32 %v1811_v18, %v1751_v35  ;;  %1853 = vmatprep.mubr.msk.f32.mxu1 %vm1169_vm4, %v1050_v34 }
 0x29e   : > { %v1753_v39 = vpop.f32.mrf.mxu0 }
 0x29f   : > { %v1051_v41 = vmul.f32 %v1033_v38, %v2379_v37  ;;  %v1754_v42 = vadd.f32 %v1753_v39, %v1752_v36 }
 0x2a0   : > { %v1755_v44 = vpop.f32.mrf.mxu0 }
 0x2a1   : > { %v1038_v45 = vadd.f32 %v1754_v42, %v932_v40  ;;  %1854 = vmatmul.mubr.msk.f32.gmra.mxu1 %vm1169_vm4, %v1051_v41 }
 0x2a2   : > { %v1756_v46 = vpop.f32.mrf.mxu0 }
 0x2a3   : > { %v1052_v47 = vmul.f32 %v1038_v45, %v2382_v43  ;;  %v1757_v48 = vadd.f32 %v1756_v46, %v1755_v44 }
 0x2a5   : > { %v1043_v50 = vadd.f32 %v1814_v33, %v1757_v48  ;;  %1856 = vmatprep.mubr.msk.f32.mxu1 %vm1169_vm4, %v1052_v47 }
 0x2a7   : > { %v1053_v51 = vmul.f32 %v1043_v50, %v2385_v49 }
 0x2a9   : > { %1857 = vmatmul.mubr.msk.f32.gmra.mxu1 %vm1169_vm4, %v1053_v51 }
 0x351   : > { %v1849_v61 = vpop.f32.mrf.mxu1 }
 0x352   : > { %v1266_v62 = vadd.f32 %v1849_v61, %v1821_v53 }
 0x353   : > { %v1260_v63 = vpop.f32.mrf.mxu1 }
 0x354   : > { %v1261_v0 = vadd.f32 %v1260_v63, %v1130_v54  ;;  %v1300_v2 = vmul.f32 %v1266_v62, %v2367_v13 }
 0x356   : > { %v1299_v1 = vmul.f32 %v1261_v0, %v2364_v7 }
 0x358   : > { %1863 = vmatprep.mubr.msk.f32.mxu1 %vm529_vm3, %v1299_v1 }
 0x359   : > { %v1852_v3 = vpop.f32.mrf.mxu1  ;;  %1864 = vmatmul.mubr.msk.f32.vlgmr.msra.gmra.mxu1 %vm529_vm3, %v1300_v2 }
 0x35a   : > { %v1276_v4 = vadd.f32 %v1852_v3, %v1824_v55 }
 0x35b   : > { %v1270_v5 = vpop.f32.mrf.mxu1 }
 0x35c   : > { %v1271_v6 = vadd.f32 %v1270_v5, %v1140_v56  ;;  %v1302_v9 = vmul.f32 %v1276_v4, %v2373_v25 }
 0x35e   : > { %v1301_v8 = vmul.f32 %v1271_v6, %v2370_v19 }
 0x360   : > { %1866 = vmatprep.mubr.msk.f32.mxu1 %vm529_vm3, %v1301_v8 }
 0x361   : > { %v1855_v10 = vpop.f32.mrf.mxu1  ;;  %1867 = vmatmul.mubr.msk.f32.gmra.mxu1 %vm529_vm3, %v1302_v9 }
 0x362   : > { %v1286_v7 = vadd.f32 %v1855_v10, %v1827_v57 }
 0x363   : > { %v1280_v11 = vpop.f32.mrf.mxu1 }
 0x364   : > { %v1281_v13 = vadd.f32 %v1280_v11, %v1150_v58  ;;  %v1304_v14 = vmul.f32 %v1286_v7, %v2379_v37 }
 0x366   : > { %v1303_v12 = vmul.f32 %v1281_v13, %v2376_v31 }
 0x368   : > { %1869 = vmatprep.mubr.msk.f32.mxu1 %vm529_vm3, %v1303_v12 }
 0x369   : > { %v1858_v15 = vpop.f32.mrf.mxu1  ;;  %1870 = vmatmul.mubr.msk.f32.gmra.mxu1 %vm529_vm3, %v1304_v14 }
 0x36a   : > { %v1296_v19 = vadd.f32 %v1858_v15, %v1830_v59 }
 0x36b   : > { %v1290_v16 = vpop.f32.mrf.mxu1 }
 0x36c   : > { %v1291_v25 = vadd.f32 %v1290_v16, %v1160_v60  ;;  %v1306_v18 = vmul.f32 %v1296_v19, %v2385_v49 }
 0x36e   : > { %v1305_v17 = vmul.f32 %v1291_v25, %v2382_v43 }
 0x370   : > { %1872 = vmatprep.mubr.msk.f32.mxu1 %vm529_vm3, %v1305_v17 }
 0x371   : > { %1873 = vmatmul.mubr.msk.f32.gmra.mxu1 %vm529_vm3, %v1306_v18  ;;  %vm1521_vm3 = vcmask 261120  }
 0x419   : > { %v1865_v20 = vpop.f32.mrf.mxu1 }
 0x41a   : > { %1439 = vrot.lane.b32.xlu0 %v1865_v20, %s2012_s18  ;;  %s2024_s18 = smov 28  }
 0x41b   : > { %v1399_v31 = vpop.f32.mrf.mxu1 }
 0x41c   : > { %1467 = vrot.lane.b32.xlu1 %v1399_v31, %s2013_s27 }
 0x41e   : > { %1470 = vrot.lane.b32.xlu0 %v1865_v20, %s2014_s0  ;;  %s2025_s0 = smov 25  }
 0x421   : > { %v1868_v37 = vpop.f32.mrf.mxu1 }
 0x422   : > { %1476 = vrot.lane.b32.xlu0 %v1868_v37, %s2015_s28  ;;  %1447 = vrot.lane.b32.xlu1 %v1868_v37, %s2016_s22  ;;  %s1537_s28 = sshll.u32 %s2154_s1, 4  ;;  %s1538_s28 = int_to_ptr.vmem [resolvable:$true] %s1537_s28 }
 0x423   : > { %v1409_v43 = vpop.f32.mrf.mxu1 }
 0x426   : > { %1473 = vrot.lane.b32.xlu1 %v1409_v43, %s2017_s11  ;;  %1443 = vrot.lane.b32.xlu0 %v1409_v43, %s2018_s29 }
 0x429   : > { %v1871_v49 = vpop.f32.mrf.mxu1 }
 0x42a   : > { %1455 = vrot.lane.b32.xlu0 %v1871_v49, %s2019_s30  ;;  %s1524_s30 = scalar_lea.sflag [#allocation6], %s2140_s12 }
 0x42b   : > { %v1419_v21 = vpop.f32.mrf.mxu1 }
 0x42c   : > { %1451 = vrot.lane.b32.xlu1 %v1419_v21, %s2020_s20  ;;  %s1939_s20 = scalar_lea.vmem %s1538_s28, 128 }
 0x42d   : > { %p1940_p1 = scmp.ne.s32.totalorder %s1538_s28, %s1939_s20 }
 0x42f   : > { %p1941_p2 = pnand %p1940_p1, %p2121_p6 }
 0x431   : > { %v1874_v22 = vpop.f32.mrf.mxu1  ;;  %p1942_p3 = pneg %p1941_p2 }
 0x432   : > { %1463 = vrot.lane.b32.xlu0 %v1874_v22, %s2013_s27  ;;  %s1686_s27 = sshll.u32 %s2103_s17, 7  ;;  %s2026_s17 = smov [#allocation5]  }
 0x433   : > { %v1429_v23 = vpop.f32.mrf.mxu1  ;;  %s2450_s29 = scalar_lea.hbm %s2498_s10, %s1686_s27 }
 0x434   : > { %1459 = vrot.lane.b32.xlu1 %v1429_v23, %s2021_s21  ;;  %s1943_s21 = sshll.u32 %s2026_s17, 4  ;;  %s1944_s21 = int_to_ptr.vmem [resolvable:$false] %s1943_s21 }
 0x435   : > { %p1946_p4 = scmp.lt.s32.totalorder %s1538_s28, %s1944_s21 }
 0x436   : > { %1482 = vrot.lane.b32.xlu0 %v1871_v49, %s2022_s25  ;;  %s1945_s25 = scalar_lea.vmem %s1944_s21, 256 }
 0x437   : > { %p1947_p5 = scmp.lt.s32.totalorder %s1945_s25, %s1939_s20 }
 0x438   : > { %1479 = vrot.lane.b32.xlu1 %v1419_v21, %s2023_s26 }
 0x439   : > { %p1948_p7 = por %p1947_p5, %p1946_p4 }
 0x43a   : > { %1488 = vrot.lane.b32.xlu0 %v1874_v22, %s2024_s18 }
 0x43b   : > { %p1949_p10 = pnand %p1948_p7, %p1942_p3 }
 0x43c   : > { %1485 = vrot.lane.b32.xlu1 %v1429_v23, %s2025_s0 }
 0x48c   : > { %v1440_v24 = vpop.permute.xlu0 %1439 }
 0x48d   : > { %v1492_v33 = vsel %vm1491_vm5, %v1399_v31, %v1440_v24 }
 0x48e   : > { %v1468_v27 = vpop.permute.xlu1 %1467 }
 0x490   : > { %v1471_v26 = vpop.permute.xlu0 %1470 }
 0x494   : > { %v1477_v28 = vpop.permute.xlu0 %1476  ;;  %v1448_v29 = vpop.permute.xlu1 %1447 }
 0x498   : > { %v1444_v30 = vpop.permute.xlu0 %1443  ;;  %v1474_v32 = vpop.permute.xlu1 %1473 }
 0x499   : > { %v1494_v34 = vsel %vm1493_vm6, %v1492_v33, %v1444_v30 }
 0x49a   : > { %v1496_v38 = vsel %vm1495_vm7, %v1494_v34, %v1448_v29 }
 0x49c   : > { %v1456_v35 = vpop.permute.xlu0 %1455 }
 0x49e   : > { %v1452_v36 = vpop.permute.xlu1 %1451 }
 0x49f   : > { %v1498_v39 = vsel %vm450_vm2, %v1496_v38, %v1452_v36  ;;  %vm1519_vm2 = vcmask 236544  }
 0x4a0   : > { %v1500_v41 = vsel %vm1499_vm8, %v1498_v39, %v1456_v35 }
 0x4a4   : > { %v1464_v40 = vpop.permute.xlu0 %1463 }
 0x4a6   : > { %v1460_v42 = vpop.permute.xlu1 %1459 }
 0x4a7   : > { %v1502_v44 = vsel %vm1501_vm9, %v1500_v41, %v1460_v42 }
 0x4a8   : > { %v1504_v45 = vsel %vm1503_vm10, %v1502_v44, %v1464_v40  ;;  %v1483_v47 = vpop.permute.xlu0 %1482 }
 0x4a9   : > { %v1506_v46 = vsel %vm1505_vm11, %v1504_v45, %v1468_v27 }
 0x4aa   : > { %v1508_v48 = vsel %vm1507_vm12, %v1506_v46, %v1471_v26  ;;  %v1480_v50 = vpop.permute.xlu1 %1479 }
 0x4ab   : > { %v1510_v51 = vsel %vm1509_vm13, %v1508_v48, %v1474_v32 }
 0x4ac   : > { %v1512_v52 = vsel %vm1511_vm14, %v1510_v51, %v1477_v28  ;;  %v1489_v56 = vpop.permute.xlu0 %1488 }
 0x4ad   : > { %v1514_v53 = vsel %vm1513_vm15, %v1512_v52, %v1480_v50 }
 0x4ae   : > { %v1516_v54 = vsel %vm1515_vm0, %v1514_v53, %v1483_v47  ;;  %v1486_v55 = vpop.permute.xlu1 %1485 }
 0x4af   : > { %v1518_v57 = vsel %vm1517_vm1, %v1516_v54, %v1486_v55 }
 0x4b0   : > { %v1520_v58 = vsel %vm1519_vm2, %v1518_v57, %v1489_v56 }
 0x4b1   : > { %1522 = vst.msk [vmem:[%s2154_s1] sm:$0xff] %vm1521_vm3, %v1520_v58 }
 0x4b2   : > { %1952 = shalt.err (!%p1949_p10)
}
 0x4b3   : > { %s1953_s1 = scalar_lea.hbm %s2450_s29, 128  ;;  %s1957_s18 = scalar_lea.hbm %s2498_s10, 256 }
 0x4b4   : > { %p1954_p11 = scmp.ne.s32.totalorder %s2450_s29, %s1953_s1  ;;  %p1958_p0 = scmp.lt.s32.totalorder %s2450_s29, %s2498_s10 }
 0x4b5   : > { %p1959_p1 = scmp.lt.s32.totalorder %s1957_s18, %s1953_s1 }
 0x4b6   : > { %p1955_p12 = pnand %p1954_p11, %p2121_p6 }
 0x4b7   : > { %p1960_p2 = por %p1959_p1, %p1958_p0 }
 0x4b8   : > { %p1956_p13 = pneg %p1955_p12 }
 0x4ba   : > { %p1961_p3 = pnand %p1960_p2, %p1956_p13 }
 0x4bc   : > { %1964 = shalt.err (!%p1961_p3)
}
 0x4bd   : > { %1875 = dma.vmem_to_hbm [thread:$0]  (%p2121_p6), %s1538_s28, 128, %s2450_s29, %s1524_s30  }
 0x4be PF: > { %s1549_s22 = sand.u32 1, %s1991_s13   ;;  %p1878_p4 = pnand %p1629_p9, %p2125_p8 }
 0x4bf   : > { %s1550_s11 = scalar_lea.sflag [#allocation6], %s1549_s22 }
 0x4c0   : > { %p1879_p5 = pneg %p1878_p4 }
 0x4c2   : > { %1986 = dma.done.wait (%p1879_p5), %s1550_s11, 128  }
 0x4c3   : > { %1988 = vsyncadd (%p1879_p5), %s1550_s11, 4294967168  ;;  %s2506_s20 = sld [smem:[#allocation8_spill]]  ;;  %p20_p7 = scmp.ge.s32.totalorder %s2107_s19, 4  }
 0x4c4   : > { %s2507_s13 = smov %s1995_s14  ;;  %s2508_s14 = smov %s1999_s15 }
 0x4c5   : > { %s2510_s16 = smov %s2107_s19  ;;  %22 = sbr.rel (!%p20_p7) target bundleno = 6 (0x6), region = 163 }
 0x4c9   : > { %s2509_s15 = smov %s2506_s20 }
 0x4ca   :  { %1555 = vsyncpa [#allocation6], 1 }
 0x4cb   :  { %1557 = vsyncpa [#allocation6 + $0x1], 1 }

</bundles_post_ra>
